<compile_context>
chip_gen: v7x
topology: tpu7x:2x2x1
jax: 0.10.0
libtpu: 0.0.40
codegen_flags: <defaults>
</compile_context>

<pallas_src>
import functools

import jax
import jax.numpy as jnp
from jax import lax
from jax.experimental import pallas as pl
from jax.experimental.pallas import tpu as pltpu


def _net_kernel(x_ref, w_ref, b_ref, o_ref, *, batch_block, last_valid):
    """x_ref / o_ref: (bn, 8, Lp) f32 blocks (natural layout, whole examples).

    w_ref: (18, 8, 8) f32  — rows 3i..3i+2 = [w_prev, w_ctr, w_next] of conv(i+1) for
           i in 0..4; rows 15..17 = conv6 weight columns for [x, x_1, x_2].
    b_ref: (6, 8, 1) f32   — biases of conv1..conv6.
    last_valid: index of the last valid sequence position (= L - 1).
    """
    seq = x_ref.shape[-1]                                # Lp (multiple of 128)

    # Boundary masks: hoisted once, reused by every layer and every example in the block.
    lane = lax.broadcasted_iota(jnp.int32, (8, seq), 1)
    not_first = lane != 0                                # left neighbor exists (pad=1)
    not_last = lane != last_valid                        # right neighbor exists (pad=1)

    # Loop-invariant weight/bias pieces (tiny; hoisted above the batch loop).
    layers = [
        (w_ref[3 * i], w_ref[3 * i + 1], w_ref[3 * i + 2], b_ref[i]) for i in range(6)
    ]

    def conv3_relu(v, wp, wc, wn, b):
        # Three small dots summed in f32 — no (24, Lp) stack is materialized.
        v_prev = jnp.where(not_first, pltpu.roll(v, shift=1, axis=1), 0.0)
        v_next = jnp.where(not_last, pltpu.roll(v, shift=seq - 1, axis=1), 0.0)
        acc = (jnp.dot(wc, v, preferred_element_type=jnp.float32)
               + jnp.dot(wp, v_prev, preferred_element_type=jnp.float32)
               + jnp.dot(wn, v_next, preferred_element_type=jnp.float32))
        return jnp.maximum(acc + b, 0.0)

    @pl.loop(0, batch_block)                             # bounds live ranges per example
    def _(bi):
        v = x_ref[bi]                                    # (8, Lp) f32
        x = conv3_relu(v, *layers[0])                    # relu(conv1)
        x = conv3_relu(x, *layers[1])                    # relu(conv2)
        x = conv3_relu(x, *layers[2])                    # relu(conv3)
        x_1 = conv3_relu(x, *layers[3])                  # relu(conv4)
        x_2 = conv3_relu(x_1, *layers[4])                # relu(conv5)
        # conv6 (1x1) on cat((x, x_1, x_2)) == three dots summed; no concat.
        w6a, w6b, w6c, b6 = layers[5]
        out = (jnp.dot(w6a, x, preferred_element_type=jnp.float32)
               + jnp.dot(w6b, x_1, preferred_element_type=jnp.float32)
               + jnp.dot(w6c, x_2, preferred_element_type=jnp.float32)) + b6
        o_ref[bi] = out.astype(o_ref.dtype)


def _chip_config():
    """Generation-aware block sizing (best effort; defaults are safe everywhere)."""
    try:
        kind = jax.devices()[0].device_kind.lower()
    except Exception:
        kind = ""
    if "v7" in kind or "7x" in kind:
        # v7x: 64 MiB VMEM per TensorCore, 2 TCs -> keep >= 2 grid steps.
        return dict(block_elems=64 * 1024, vmem_limit=40 * 1024 * 1024, dual_core=True)
    # v5e / v6e (and default): 128 MiB VMEM, single TensorCore -> one big block is fine.
    return dict(block_elems=128 * 1024, vmem_limit=64 * 1024 * 1024, dual_core=False)


def net_forward(x, params, *, target_block_elems=None, vmem_limit_bytes=None):
    """x: (N, 8, L) float32.  params: PyTorch-layout weights
    [w1(8,8,3), b1(8,), ..., w5, b5, w6(8,24,1), b6(8,)].  Returns (N, 8, L) float32."""
    w1, b1, w2, b2, w3, b3, w4, b4, w5, b5, w6, b6 = params
    N, C, L = x.shape
    assert C == 8, "Net expects 8 input channels"

    cfg = _chip_config()
    if target_block_elems is None:
        target_block_elems = cfg["block_elems"]
    if vmem_limit_bytes is None:
        vmem_limit_bytes = cfg["vmem_limit"]

    # Lane-dense sizing: pad L up to a multiple of 128 (only if needed), pick a batch
    # block so each grid step moves ~target_block_elems f32 lanes of work.
    Lp = ((L + 127) // 128) * 128
    # TODO(synk): add a sequence-chunking grid axis (with halo handling) for very long L
    # where a single (1, 8, Lp) block would not fit VMEM.
    bn = max(1, min(N, target_block_elems // Lp))
    if cfg["dual_core"] and N >= 2:
        bn = min(bn, pl.cdiv(N, 2))                      # keep >= 2 steps for the 2 TCs
    # If no lane padding is needed, prefer a bn that divides N so the wrapper does not
    # need a batch-pad HBM pass (accept it unless it explodes the grid-step count).
    if L == Lp and N % bn != 0:
        d = bn
        while N % d != 0:
            d -= 1
        if N // d <= 4 * pl.cdiv(N, bn):
            bn = d
    Np = pl.cdiv(N, bn) * bn
    grid = (Np // bn,)

    xp = x.astype(jnp.float32)
    padded = (Np, Lp) != (N, L)
    if padded:
        xp = jnp.pad(xp, ((0, Np - N), (0, 0), (0, Lp - L)))

    # Pack the 12 params into 2 slabs (tiny; done once).
    taps = []
    for w in (w1, w2, w3, w4, w5):                       # (8, 8, 3), taps k=0/1/2
        taps += [w[:, :, 0], w[:, :, 1], w[:, :, 2]]     # prev | ctr | next
    w6m = w6[:, :, 0]                                    # (8, 24): [x | x_1 | x_2]
    taps += [w6m[:, 0:8], w6m[:, 8:16], w6m[:, 16:24]]
    w_slab = jnp.stack(taps, axis=0).astype(jnp.float32)                 # (18, 8, 8)
    b_slab = jnp.stack([b1, b2, b3, b4, b5, b6], axis=0).reshape(6, 8, 1) \
                .astype(jnp.float32)                                     # (6, 8, 1)

    kernel = functools.partial(_net_kernel, batch_block=bn, last_valid=L - 1)

    # Advisory cost for XLA scheduling: 6 layers x 8 out x 24 in MACs per position.
    flops = 2 * 6 * 8 * 24 * N * L
    bytes_accessed = 2 * Np * 8 * Lp * 4                 # f32 in + f32 out

    out = pl.pallas_call(
        kernel,
        out_shape=jax.ShapeDtypeStruct((Np, 8, Lp), jnp.float32),
        grid_spec=pltpu.PrefetchScalarGridSpec(
            num_scalar_prefetch=0,
            grid=grid,
            in_specs=[
                pl.BlockSpec((bn, 8, Lp), lambda i: (i, 0, 0)),   # activations
                pl.BlockSpec((18, 8, 8), lambda i: (0, 0, 0)),    # weight slab (resident)
                pl.BlockSpec((6, 8, 1), lambda i: (0, 0, 0)),     # bias slab (resident)
            ],
            out_specs=pl.BlockSpec((bn, 8, Lp), lambda i: (i, 0, 0)),
        ),
        compiler_params=pltpu.CompilerParams(
            dimension_semantics=("parallel",),
            vmem_limit_bytes=vmem_limit_bytes,
        ),
        cost_estimate=pl.CostEstimate(flops=flops, transcendentals=0,
                                      bytes_accessed=bytes_accessed),
    )(xp, w_slab, b_slab)

    if padded:
        out = out[:N, :, :L]
    return out


# ---------------- pure-JAX reference (PyTorch semantics, f32) ----------------
def _conv1d_ref(x, w, b, pad):
    y = lax.conv_general_dilated(
        x, w, window_strides=(1,), padding=((pad, pad),),
        dimension_numbers=("NCH", "OIH", "NCH"))
    return y + b.reshape(1, -1, 1)


def net_reference(x, params):
    w1, b1, w2, b2, w3, b3, w4, b4, w5, b5, w6, b6 = params
    relu = lambda v: jnp.maximum(v, 0.0)
    x = relu(_conv1d_ref(x, w1, b1, 1))
    x = relu(_conv1d_ref(x, w2, b2, 1))
    x = relu(_conv1d_ref(x, w3, b3, 1))
    x_1 = relu(_conv1d_ref(x, w4, b4, 1))
    x_cat = jnp.concatenate((x, x_1), axis=1)
    x_2 = relu(_conv1d_ref(x_1, w5, b5, 1))
    x_cat = jnp.concatenate((x_cat, x_2), axis=1)
    return _conv1d_ref(x_cat, w6, b6, 0)


def init_params(key):
    keys = jax.random.split(key, 12)
    params = []
    for i in range(5):  # conv1..conv5: Conv1d(8, 8, 3) — PyTorch layout (C_out, C_in, K)
        w = 0.1 * jax.random.normal(keys[2 * i], (8, 8, 3), jnp.float32)
        b = 0.1 * jax.random.normal(keys[2 * i + 1], (8,), jnp.float32)
        params += [w, b]
    # conv6: Conv1d(24, 8, 1)
    w6 = 0.1 * jax.random.normal(keys[10], (8, 24, 1), jnp.float32)
    b6 = 0.1 * jax.random.normal(keys[11], (8,), jnp.float32)
    params += [w6, b6]
    return params


if __name__ == "__main__":
    key = jax.random.PRNGKey(0)
    k_x, k_p = jax.random.split(key)

    # Small demo shapes; L is deliberately not a multiple of 128 to exercise the
    # lane-padding path, and N > 1 so the grid / in-kernel batch loop are exercised.
    N, C, L = 6, 8, 100
    x = jax.random.normal(k_x, (N, C, L), jnp.float32)
    params = init_params(k_p)

    net = jax.jit(net_forward)
    out = jax.block_until_ready(net(x, params))
    ref = jax.block_until_ready(net_reference(x, params))

    assert out.shape == (N, 8, L)
    # f32 activations in-kernel; only the MXU matmul precision differs from the
    # reference, so the error is typically ~1e-3 — 5e-2 is a comfortable bound.
    err = jnp.max(jnp.abs(out - ref))
    assert jnp.allclose(out, ref, atol=5e-2, rtol=5e-2), \
        f"mismatch vs reference, max abs err = {err}"

    print("KERNEL_OK")
</pallas_src>

<mosaic_0001>
module attributes {stable_mosaic.version = 11 : i64} {
  func.func @_net_kernel(%arg0: i32, %arg1: memref<6x8x128xf32, #tpu.memory_space<vmem>>, %arg2: memref<18x8x8xf32, #tpu.memory_space<vmem>>, %arg3: memref<6x8x1xf32, #tpu.memory_space<vmem>>, %arg4: memref<6x8x128xf32, #tpu.memory_space<vmem>>) attributes {dimension_semantics = [#tpu.dimension_semantics<parallel>], iteration_bounds = array<i64: 1>, scalar_prefetch = 0 : i64, scratch_operands = 0 : i64, tpu.core_type = #tpu.core_type<tc>, window_params = [{transform_indices = @transform_0, window_bounds = array<i64: 6, 8, 128>}, {pipeline_mode = #tpu.pipeline_mode<synchronous>, transform_indices = @transform_1, window_bounds = array<i64: 18, 8, 8>}, {pipeline_mode = #tpu.pipeline_mode<synchronous>, transform_indices = @transform_2, window_bounds = array<i64: 6, 8, 1>}, {transform_indices = @transform_3, window_bounds = array<i64: 6, 8, 128>}]} {
    %0 = tpu.iota {dimensions = array<i32: 1>} : vector<8x128xi32>
    %c0_i32 = arith.constant 0 : i32
    %1 = vector.broadcast %c0_i32 : i32 to vector<8x128xi32>
    %2 = arith.cmpi ne, %0, %1 : vector<8x128xi32>
    %c99_i32 = arith.constant 99 : i32
    %3 = vector.broadcast %c99_i32 : i32 to vector<8x128xi32>
    %4 = arith.cmpi ne, %0, %3 : vector<8x128xi32>
    %c0 = arith.constant 0 : index
    %c0_0 = arith.constant 0 : index
    %c0_1 = arith.constant 0 : index
    %5 = vector.load %arg2[%c0, %c0_0, %c0_1] : memref<18x8x8xf32, #tpu.memory_space<vmem>>, vector<1x8x8xf32>
    %6 = vector.shape_cast %5 : vector<1x8x8xf32> to vector<8x8xf32>
    %c1 = arith.constant 1 : index
    %c0_2 = arith.constant 0 : index
    %c0_3 = arith.constant 0 : index
    %7 = vector.load %arg2[%c1, %c0_2, %c0_3] : memref<18x8x8xf32, #tpu.memory_space<vmem>>, vector<1x8x8xf32>
    %8 = vector.shape_cast %7 : vector<1x8x8xf32> to vector<8x8xf32>
    %c2 = arith.constant 2 : index
    %c0_4 = arith.constant 0 : index
    %c0_5 = arith.constant 0 : index
    %9 = vector.load %arg2[%c2, %c0_4, %c0_5] : memref<18x8x8xf32, #tpu.memory_space<vmem>>, vector<1x8x8xf32>
    %10 = vector.shape_cast %9 : vector<1x8x8xf32> to vector<8x8xf32>
    %c0_6 = arith.constant 0 : index
    %c0_7 = arith.constant 0 : index
    %c0_8 = arith.constant 0 : index
    %11 = vector.load %arg3[%c0_6, %c0_7, %c0_8] : memref<6x8x1xf32, #tpu.memory_space<vmem>>, vector<1x8x1xf32>
    %12 = vector.shape_cast %11 : vector<1x8x1xf32> to vector<8x1xf32>
    %c3 = arith.constant 3 : index
    %c0_9 = arith.constant 0 : index
    %c0_10 = arith.constant 0 : index
    %13 = vector.load %arg2[%c3, %c0_9, %c0_10] : memref<18x8x8xf32, #tpu.memory_space<vmem>>, vector<1x8x8xf32>
    %14 = vector.shape_cast %13 : vector<1x8x8xf32> to vector<8x8xf32>
    %c4 = arith.constant 4 : index
    %c0_11 = arith.constant 0 : index
    %c0_12 = arith.constant 0 : index
    %15 = vector.load %arg2[%c4, %c0_11, %c0_12] : memref<18x8x8xf32, #tpu.memory_space<vmem>>, vector<1x8x8xf32>
    %16 = vector.shape_cast %15 : vector<1x8x8xf32> to vector<8x8xf32>
    %c5 = arith.constant 5 : index
    %c0_13 = arith.constant 0 : index
    %c0_14 = arith.constant 0 : index
    %17 = vector.load %arg2[%c5, %c0_13, %c0_14] : memref<18x8x8xf32, #tpu.memory_space<vmem>>, vector<1x8x8xf32>
    %18 = vector.shape_cast %17 : vector<1x8x8xf32> to vector<8x8xf32>
    %c1_15 = arith.constant 1 : index
    %c0_16 = arith.constant 0 : index
    %c0_17 = arith.constant 0 : index
    %19 = vector.load %arg3[%c1_15, %c0_16, %c0_17] : memref<6x8x1xf32, #tpu.memory_space<vmem>>, vector<1x8x1xf32>
    %20 = vector.shape_cast %19 : vector<1x8x1xf32> to vector<8x1xf32>
    %c6 = arith.constant 6 : index
    %c0_18 = arith.constant 0 : index
    %c0_19 = arith.constant 0 : index
    %21 = vector.load %arg2[%c6, %c0_18, %c0_19] : memref<18x8x8xf32, #tpu.memory_space<vmem>>, vector<1x8x8xf32>
    %22 = vector.shape_cast %21 : vector<1x8x8xf32> to vector<8x8xf32>
    %c7 = arith.constant 7 : index
    %c0_20 = arith.constant 0 : index
    %c0_21 = arith.constant 0 : index
    %23 = vector.load %arg2[%c7, %c0_20, %c0_21] : memref<18x8x8xf32, #tpu.memory_space<vmem>>, vector<1x8x8xf32>
    %24 = vector.shape_cast %23 : vector<1x8x8xf32> to vector<8x8xf32>
    %c8 = arith.constant 8 : index
    %c0_22 = arith.constant 0 : index
    %c0_23 = arith.constant 0 : index
    %25 = vector.load %arg2[%c8, %c0_22, %c0_23] : memref<18x8x8xf32, #tpu.memory_space<vmem>>, vector<1x8x8xf32>
    %26 = vector.shape_cast %25 : vector<1x8x8xf32> to vector<8x8xf32>
    %c2_24 = arith.constant 2 : index
    %c0_25 = arith.constant 0 : index
    %c0_26 = arith.constant 0 : index
    %27 = vector.load %arg3[%c2_24, %c0_25, %c0_26] : memref<6x8x1xf32, #tpu.memory_space<vmem>>, vector<1x8x1xf32>
    %28 = vector.shape_cast %27 : vector<1x8x1xf32> to vector<8x1xf32>
    %c9 = arith.constant 9 : index
    %c0_27 = arith.constant 0 : index
    %c0_28 = arith.constant 0 : index
    %29 = vector.load %arg2[%c9, %c0_27, %c0_28] : memref<18x8x8xf32, #tpu.memory_space<vmem>>, vector<1x8x8xf32>
    %30 = vector.shape_cast %29 : vector<1x8x8xf32> to vector<8x8xf32>
    %c10 = arith.constant 10 : index
    %c0_29 = arith.constant 0 : index
    %c0_30 = arith.constant 0 : index
    %31 = vector.load %arg2[%c10, %c0_29, %c0_30] : memref<18x8x8xf32, #tpu.memory_space<vmem>>, vector<1x8x8xf32>
    %32 = vector.shape_cast %31 : vector<1x8x8xf32> to vector<8x8xf32>
    %c11 = arith.constant 11 : index
    %c0_31 = arith.constant 0 : index
    %c0_32 = arith.constant 0 : index
    %33 = vector.load %arg2[%c11, %c0_31, %c0_32] : memref<18x8x8xf32, #tpu.memory_space<vmem>>, vector<1x8x8xf32>
    %34 = vector.shape_cast %33 : vector<1x8x8xf32> to vector<8x8xf32>
    %c3_33 = arith.constant 3 : index
    %c0_34 = arith.constant 0 : index
    %c0_35 = arith.constant 0 : index
    %35 = vector.load %arg3[%c3_33, %c0_34, %c0_35] : memref<6x8x1xf32, #tpu.memory_space<vmem>>, vector<1x8x1xf32>
    %36 = vector.shape_cast %35 : vector<1x8x1xf32> to vector<8x1xf32>
    %c12 = arith.constant 12 : index
    %c0_36 = arith.constant 0 : index
    %c0_37 = arith.constant 0 : index
    %37 = vector.load %arg2[%c12, %c0_36, %c0_37] : memref<18x8x8xf32, #tpu.memory_space<vmem>>, vector<1x8x8xf32>
    %38 = vector.shape_cast %37 : vector<1x8x8xf32> to vector<8x8xf32>
    %c13 = arith.constant 13 : index
    %c0_38 = arith.constant 0 : index
    %c0_39 = arith.constant 0 : index
    %39 = vector.load %arg2[%c13, %c0_38, %c0_39] : memref<18x8x8xf32, #tpu.memory_space<vmem>>, vector<1x8x8xf32>
    %40 = vector.shape_cast %39 : vector<1x8x8xf32> to vector<8x8xf32>
    %c14 = arith.constant 14 : index
    %c0_40 = arith.constant 0 : index
    %c0_41 = arith.constant 0 : index
    %41 = vector.load %arg2[%c14, %c0_40, %c0_41] : memref<18x8x8xf32, #tpu.memory_space<vmem>>, vector<1x8x8xf32>
    %42 = vector.shape_cast %41 : vector<1x8x8xf32> to vector<8x8xf32>
    %c4_42 = arith.constant 4 : index
    %c0_43 = arith.constant 0 : index
    %c0_44 = arith.constant 0 : index
    %43 = vector.load %arg3[%c4_42, %c0_43, %c0_44] : memref<6x8x1xf32, #tpu.memory_space<vmem>>, vector<1x8x1xf32>
    %44 = vector.shape_cast %43 : vector<1x8x1xf32> to vector<8x1xf32>
    %c15 = arith.constant 15 : index
    %c0_45 = arith.constant 0 : index
    %c0_46 = arith.constant 0 : index
    %45 = vector.load %arg2[%c15, %c0_45, %c0_46] : memref<18x8x8xf32, #tpu.memory_space<vmem>>, vector<1x8x8xf32>
    %46 = vector.shape_cast %45 : vector<1x8x8xf32> to vector<8x8xf32>
    %c16 = arith.constant 16 : index
    %c0_47 = arith.constant 0 : index
    %c0_48 = arith.constant 0 : index
    %47 = vector.load %arg2[%c16, %c0_47, %c0_48] : memref<18x8x8xf32, #tpu.memory_space<vmem>>, vector<1x8x8xf32>
    %48 = vector.shape_cast %47 : vector<1x8x8xf32> to vector<8x8xf32>
    %c17 = arith.constant 17 : index
    %c0_49 = arith.constant 0 : index
    %c0_50 = arith.constant 0 : index
    %49 = vector.load %arg2[%c17, %c0_49, %c0_50] : memref<18x8x8xf32, #tpu.memory_space<vmem>>, vector<1x8x8xf32>
    %50 = vector.shape_cast %49 : vector<1x8x8xf32> to vector<8x8xf32>
    %c5_51 = arith.constant 5 : index
    %c0_52 = arith.constant 0 : index
    %c0_53 = arith.constant 0 : index
    %51 = vector.load %arg3[%c5_51, %c0_52, %c0_53] : memref<6x8x1xf32, #tpu.memory_space<vmem>>, vector<1x8x1xf32>
    %52 = vector.shape_cast %51 : vector<1x8x1xf32> to vector<8x1xf32>
    %c0_i32_54 = arith.constant 0 : i32
    %c6_i32 = arith.constant 6 : i32
    %53 = arith.addi %c0_i32_54, %c6_i32 : i32
    %c1_i32 = arith.constant 1 : i32
    scf.for %arg5 = %c0_i32_54 to %53 step %c1_i32  : i32 {
      %c1_i32_56 = arith.constant 1 : i32
      %54 = arith.muli %arg5, %c1_i32_56 : i32
      %c0_i32_57 = arith.constant 0 : i32
      %55 = arith.addi %c0_i32_57, %54 : i32
      %56 = arith.index_cast %55 : i32 to index
      %c0_58 = arith.constant 0 : index
      %c0_59 = arith.constant 0 : index
      %57 = vector.load %arg1[%56, %c0_58, %c0_59] : memref<6x8x128xf32, #tpu.memory_space<vmem>>, vector<1x8x128xf32>
      %58 = vector.shape_cast %57 : vector<1x8x128xf32> to vector<8x128xf32>
      %c1_i32_60 = arith.constant 1 : i32
      %59 = tpu.dynamic_rotate %58 by %c1_i32_60 dim 1 : vector<8x128xf32>, i32 -> vector<8x128xf32>
      %cst = arith.constant 0.000000e+00 : f32
      %60 = vector.broadcast %cst : f32 to vector<8x128xf32>
      %61 = arith.select %2, %59, %60 : vector<8x128xi1>, vector<8x128xf32>
      %c127_i32 = arith.constant 127 : i32
      %62 = tpu.dynamic_rotate %58 by %c127_i32 dim 1 : vector<8x128xf32>, i32 -> vector<8x128xf32>
      %cst_61 = arith.constant 0.000000e+00 : f32
      %63 = vector.broadcast %cst_61 : f32 to vector<8x128xf32>
      %64 = arith.select %4, %62, %63 : vector<8x128xi1>, vector<8x128xf32>
      %cst_62 = arith.constant dense<0.000000e+00> : vector<8x128xf32>
      %65 = tpu.matmul %8, %58, %cst_62 {dimension_numbers = #tpu.dot_dimension_numbers<[1], [0], [0], [1], [0, 0, 1, 1], [], []>} : vector<8x8xf32>, vector<8x128xf32>, vector<8x128xf32> -> vector<8x128xf32>
      %cst_63 = arith.constant dense<0.000000e+00> : vector<8x128xf32>
      %66 = tpu.matmul %6, %61, %cst_63 {dimension_numbers = #tpu.dot_dimension_numbers<[1], [0], [0], [1], [0, 0, 1, 1], [], []>} : vector<8x8xf32>, vector<8x128xf32>, vector<8x128xf32> -> vector<8x128xf32>
      %67 = arith.addf %65, %66 : vector<8x128xf32>
      %cst_64 = arith.constant dense<0.000000e+00> : vector<8x128xf32>
      %68 = tpu.matmul %10, %64, %cst_64 {dimension_numbers = #tpu.dot_dimension_numbers<[1], [0], [0], [1], [0, 0, 1, 1], [], []>} : vector<8x8xf32>, vector<8x128xf32>, vector<8x128xf32> -> vector<8x128xf32>
      %69 = arith.addf %67, %68 : vector<8x128xf32>
      %70 = vector.broadcast %12 : vector<8x1xf32> to vector<8x128xf32>
      %71 = arith.addf %69, %70 : vector<8x128xf32>
      %cst_65 = arith.constant 0.000000e+00 : f32
      %72 = vector.broadcast %cst_65 : f32 to vector<8x128xf32>
      %73 = arith.maximumf %71, %72 : vector<8x128xf32>
      %c1_i32_66 = arith.constant 1 : i32
      %74 = tpu.dynamic_rotate %73 by %c1_i32_66 dim 1 : vector<8x128xf32>, i32 -> vector<8x128xf32>
      %cst_67 = arith.constant 0.000000e+00 : f32
      %75 = vector.broadcast %cst_67 : f32 to vector<8x128xf32>
      %76 = arith.select %2, %74, %75 : vector<8x128xi1>, vector<8x128xf32>
      %c127_i32_68 = arith.constant 127 : i32
      %77 = tpu.dynamic_rotate %73 by %c127_i32_68 dim 1 : vector<8x128xf32>, i32 -> vector<8x128xf32>
      %cst_69 = arith.constant 0.000000e+00 : f32
      %78 = vector.broadcast %cst_69 : f32 to vector<8x128xf32>
      %79 = arith.select %4, %77, %78 : vector<8x128xi1>, vector<8x128xf32>
      %cst_70 = arith.constant dense<0.000000e+00> : vector<8x128xf32>
      %80 = tpu.matmul %16, %73, %cst_70 {dimension_numbers = #tpu.dot_dimension_numbers<[1], [0], [0], [1], [0, 0, 1, 1], [], []>} : vector<8x8xf32>, vector<8x128xf32>, vector<8x128xf32> -> vector<8x128xf32>
      %cst_71 = arith.constant dense<0.000000e+00> : vector<8x128xf32>
      %81 = tpu.matmul %14, %76, %cst_71 {dimension_numbers = #tpu.dot_dimension_numbers<[1], [0], [0], [1], [0, 0, 1, 1], [], []>} : vector<8x8xf32>, vector<8x128xf32>, vector<8x128xf32> -> vector<8x128xf32>
      %82 = arith.addf %80, %81 : vector<8x128xf32>
      %cst_72 = arith.constant dense<0.000000e+00> : vector<8x128xf32>
      %83 = tpu.matmul %18, %79, %cst_72 {dimension_numbers = #tpu.dot_dimension_numbers<[1], [0], [0], [1], [0, 0, 1, 1], [], []>} : vector<8x8xf32>, vector<8x128xf32>, vector<8x128xf32> -> vector<8x128xf32>
      %84 = arith.addf %82, %83 : vector<8x128xf32>
      %85 = vector.broadcast %20 : vector<8x1xf32> to vector<8x128xf32>
      %86 = arith.addf %84, %85 : vector<8x128xf32>
      %cst_73 = arith.constant 0.000000e+00 : f32
      %87 = vector.broadcast %cst_73 : f32 to vector<8x128xf32>
      %88 = arith.maximumf %86, %87 : vector<8x128xf32>
      %c1_i32_74 = arith.constant 1 : i32
      %89 = tpu.dynamic_rotate %88 by %c1_i32_74 dim 1 : vector<8x128xf32>, i32 -> vector<8x128xf32>
      %cst_75 = arith.constant 0.000000e+00 : f32
      %90 = vector.broadcast %cst_75 : f32 to vector<8x128xf32>
      %91 = arith.select %2, %89, %90 : vector<8x128xi1>, vector<8x128xf32>
      %c127_i32_76 = arith.constant 127 : i32
      %92 = tpu.dynamic_rotate %88 by %c127_i32_76 dim 1 : vector<8x128xf32>, i32 -> vector<8x128xf32>
      %cst_77 = arith.constant 0.000000e+00 : f32
      %93 = vector.broadcast %cst_77 : f32 to vector<8x128xf32>
      %94 = arith.select %4, %92, %93 : vector<8x128xi1>, vector<8x128xf32>
      %cst_78 = arith.constant dense<0.000000e+00> : vector<8x128xf32>
      %95 = tpu.matmul %24, %88, %cst_78 {dimension_numbers = #tpu.dot_dimension_numbers<[1], [0], [0], [1], [0, 0, 1, 1], [], []>} : vector<8x8xf32>, vector<8x128xf32>, vector<8x128xf32> -> vector<8x128xf32>
      %cst_79 = arith.constant dense<0.000000e+00> : vector<8x128xf32>
      %96 = tpu.matmul %22, %91, %cst_79 {dimension_numbers = #tpu.dot_dimension_numbers<[1], [0], [0], [1], [0, 0, 1, 1], [], []>} : vector<8x8xf32>, vector<8x128xf32>, vector<8x128xf32> -> vector<8x128xf32>
      %97 = arith.addf %95, %96 : vector<8x128xf32>
      %cst_80 = arith.constant dense<0.000000e+00> : vector<8x128xf32>
      %98 = tpu.matmul %26, %94, %cst_80 {dimension_numbers = #tpu.dot_dimension_numbers<[1], [0], [0], [1], [0, 0, 1, 1], [], []>} : vector<8x8xf32>, vector<8x128xf32>, vector<8x128xf32> -> vector<8x128xf32>
      %99 = arith.addf %97, %98 : vector<8x128xf32>
      %100 = vector.broadcast %28 : vector<8x1xf32> to vector<8x128xf32>
      %101 = arith.addf %99, %100 : vector<8x128xf32>
      %cst_81 = arith.constant 0.000000e+00 : f32
      %102 = vector.broadcast %cst_81 : f32 to vector<8x128xf32>
      %103 = arith.maximumf %101, %102 : vector<8x128xf32>
      %c1_i32_82 = arith.constant 1 : i32
      %104 = tpu.dynamic_rotate %103 by %c1_i32_82 dim 1 : vector<8x128xf32>, i32 -> vector<8x128xf32>
      %cst_83 = arith.constant 0.000000e+00 : f32
      %105 = vector.broadcast %cst_83 : f32 to vector<8x128xf32>
      %106 = arith.select %2, %104, %105 : vector<8x128xi1>, vector<8x128xf32>
      %c127_i32_84 = arith.constant 127 : i32
      %107 = tpu.dynamic_rotate %103 by %c127_i32_84 dim 1 : vector<8x128xf32>, i32 -> vector<8x128xf32>
      %cst_85 = arith.constant 0.000000e+00 : f32
      %108 = vector.broadcast %cst_85 : f32 to vector<8x128xf32>
      %109 = arith.select %4, %107, %108 : vector<8x128xi1>, vector<8x128xf32>
      %cst_86 = arith.constant dense<0.000000e+00> : vector<8x128xf32>
      %110 = tpu.matmul %32, %103, %cst_86 {dimension_numbers = #tpu.dot_dimension_numbers<[1], [0], [0], [1], [0, 0, 1, 1], [], []>} : vector<8x8xf32>, vector<8x128xf32>, vector<8x128xf32> -> vector<8x128xf32>
      %cst_87 = arith.constant dense<0.000000e+00> : vector<8x128xf32>
      %111 = tpu.matmul %30, %106, %cst_87 {dimension_numbers = #tpu.dot_dimension_numbers<[1], [0], [0], [1], [0, 0, 1, 1], [], []>} : vector<8x8xf32>, vector<8x128xf32>, vector<8x128xf32> -> vector<8x128xf32>
      %112 = arith.addf %110, %111 : vector<8x128xf32>
      %cst_88 = arith.constant dense<0.000000e+00> : vector<8x128xf32>
      %113 = tpu.matmul %34, %109, %cst_88 {dimension_numbers = #tpu.dot_dimension_numbers<[1], [0], [0], [1], [0, 0, 1, 1], [], []>} : vector<8x8xf32>, vector<8x128xf32>, vector<8x128xf32> -> vector<8x128xf32>
      %114 = arith.addf %112, %113 : vector<8x128xf32>
      %115 = vector.broadcast %36 : vector<8x1xf32> to vector<8x128xf32>
      %116 = arith.addf %114, %115 : vector<8x128xf32>
      %cst_89 = arith.constant 0.000000e+00 : f32
      %117 = vector.broadcast %cst_89 : f32 to vector<8x128xf32>
      %118 = arith.maximumf %116, %117 : vector<8x128xf32>
      %c1_i32_90 = arith.constant 1 : i32
      %119 = tpu.dynamic_rotate %118 by %c1_i32_90 dim 1 : vector<8x128xf32>, i32 -> vector<8x128xf32>
      %cst_91 = arith.constant 0.000000e+00 : f32
      %120 = vector.broadcast %cst_91 : f32 to vector<8x128xf32>
      %121 = arith.select %2, %119, %120 : vector<8x128xi1>, vector<8x128xf32>
      %c127_i32_92 = arith.constant 127 : i32
      %122 = tpu.dynamic_rotate %118 by %c127_i32_92 dim 1 : vector<8x128xf32>, i32 -> vector<8x128xf32>
      %cst_93 = arith.constant 0.000000e+00 : f32
      %123 = vector.broadcast %cst_93 : f32 to vector<8x128xf32>
      %124 = arith.select %4, %122, %123 : vector<8x128xi1>, vector<8x128xf32>
      %cst_94 = arith.constant dense<0.000000e+00> : vector<8x128xf32>
      %125 = tpu.matmul %40, %118, %cst_94 {dimension_numbers = #tpu.dot_dimension_numbers<[1], [0], [0], [1], [0, 0, 1, 1], [], []>} : vector<8x8xf32>, vector<8x128xf32>, vector<8x128xf32> -> vector<8x128xf32>
      %cst_95 = arith.constant dense<0.000000e+00> : vector<8x128xf32>
      %126 = tpu.matmul %38, %121, %cst_95 {dimension_numbers = #tpu.dot_dimension_numbers<[1], [0], [0], [1], [0, 0, 1, 1], [], []>} : vector<8x8xf32>, vector<8x128xf32>, vector<8x128xf32> -> vector<8x128xf32>
      %127 = arith.addf %125, %126 : vector<8x128xf32>
      %cst_96 = arith.constant dense<0.000000e+00> : vector<8x128xf32>
      %128 = tpu.matmul %42, %124, %cst_96 {dimension_numbers = #tpu.dot_dimension_numbers<[1], [0], [0], [1], [0, 0, 1, 1], [], []>} : vector<8x8xf32>, vector<8x128xf32>, vector<8x128xf32> -> vector<8x128xf32>
      %129 = arith.addf %127, %128 : vector<8x128xf32>
      %130 = vector.broadcast %44 : vector<8x1xf32> to vector<8x128xf32>
      %131 = arith.addf %129, %130 : vector<8x128xf32>
      %cst_97 = arith.constant 0.000000e+00 : f32
      %132 = vector.broadcast %cst_97 : f32 to vector<8x128xf32>
      %133 = arith.maximumf %131, %132 : vector<8x128xf32>
      %cst_98 = arith.constant dense<0.000000e+00> : vector<8x128xf32>
      %134 = tpu.matmul %46, %103, %cst_98 {dimension_numbers = #tpu.dot_dimension_numbers<[1], [0], [0], [1], [0, 0, 1, 1], [], []>} : vector<8x8xf32>, vector<8x128xf32>, vector<8x128xf32> -> vector<8x128xf32>
      %cst_99 = arith.constant dense<0.000000e+00> : vector<8x128xf32>
      %135 = tpu.matmul %48, %118, %cst_99 {dimension_numbers = #tpu.dot_dimension_numbers<[1], [0], [0], [1], [0, 0, 1, 1], [], []>} : vector<8x8xf32>, vector<8x128xf32>, vector<8x128xf32> -> vector<8x128xf32>
      %136 = arith.addf %134, %135 : vector<8x128xf32>
      %cst_100 = arith.constant dense<0.000000e+00> : vector<8x128xf32>
      %137 = tpu.matmul %50, %133, %cst_100 {dimension_numbers = #tpu.dot_dimension_numbers<[1], [0], [0], [1], [0, 0, 1, 1], [], []>} : vector<8x8xf32>, vector<8x128xf32>, vector<8x128xf32> -> vector<8x128xf32>
      %138 = arith.addf %136, %137 : vector<8x128xf32>
      %139 = vector.broadcast %52 : vector<8x1xf32> to vector<8x128xf32>
      %140 = arith.addf %138, %139 : vector<8x128xf32>
      %141 = arith.index_cast %55 : i32 to index
      %c0_101 = arith.constant 0 : index
      %c0_102 = arith.constant 0 : index
      %142 = vector.load %arg4[%141, %c0_101, %c0_102] : memref<6x8x128xf32, #tpu.memory_space<vmem>>, vector<1x8x128xf32>
      %143 = vector.shape_cast %142 : vector<1x8x128xf32> to vector<8x128xf32>
      %144 = vector.shape_cast %140 : vector<8x128xf32> to vector<1x8x128xf32>
      tpu.vector_store %arg4[%141, %c0_101, %c0_102], %144 {strides = array<i32>} : memref<6x8x128xf32, #tpu.memory_space<vmem>>, vector<1x8x128xf32>,
    }
    %c6_i32_55 = arith.constant 6 : i32
    return
  }
  func.func @transform_0(%arg0: i32) -> (i32, i32, i32) {
    %c0_i32 = arith.constant 0 : i32
    %c0_i32_0 = arith.constant 0 : i32
    %c0_i32_1 = arith.constant 0 : i32
    return %arg0, %c0_i32, %c0_i32_0 : i32, i32, i32
  }
  func.func @transform_1(%arg0: i32) -> (i32, i32, i32) {
    %c0_i32 = arith.constant 0 : i32
    %c0_i32_0 = arith.constant 0 : i32
    %c0_i32_1 = arith.constant 0 : i32
    %c0_i32_2 = arith.constant 0 : i32
    return %c0_i32, %c0_i32_0, %c0_i32_1 : i32, i32, i32
  }
  func.func @transform_2(%arg0: i32) -> (i32, i32, i32) {
    %c0_i32 = arith.constant 0 : i32
    %c0_i32_0 = arith.constant 0 : i32
    %c0_i32_1 = arith.constant 0 : i32
    %c0_i32_2 = arith.constant 0 : i32
    return %c0_i32, %c0_i32_0, %c0_i32_1 : i32, i32, i32
  }
  func.func @transform_3(%arg0: i32) -> (i32, i32, i32) {
    %c0_i32 = arith.constant 0 : i32
    %c0_i32_0 = arith.constant 0 : i32
    %c0_i32_1 = arith.constant 0 : i32
    return %arg0, %c0_i32, %c0_i32_0 : i32, i32, i32
  }
}

</mosaic_0001>

<bundles_post_ra>
// kernel: net_forward.1
= control target key start
LH: loop header
LB: loop body
LE: loop exit
PB: predicated region body
PF: predicated region fallthrough
CT: control target
= control target key end

     0   :  { %8 = vsyncpa [#allocation3], 0  ;;  %s2103_s0 = inlined_call_operand.hbm [shape: f32[6,8,128], index: 0, kind: input, shape index: {}]   ;;  %s2104_s1 = inlined_call_operand.hbm [shape: f32[18,8,8], index: 1, kind: input, shape index: {}]   ;;  %s2105_s2 = inlined_call_operand.hbm [shape: f32[6,8,1], index: 2, kind: input, shape index: {}]   ;;  %s2106_s3 = inlined_call_operand.hbm [shape: f32[6,8,128], index: 3, kind: output, shape index: {}]  }
   0x1   :  { %9 = vsyncpa [#allocation6], 0 }
   0x2   :  { %10 = vsyncpa [#allocation4], 0  ;;  %s1814_s12 = smov [#allocation5]   ;;  %s1815_s14 = smov [#allocation2]  }
   0x3   :  { %s28_s13 = sshll.u32 %s1814_s12, 4  ;;  %s16_s15 = sshll.u32 %s1815_s14, 4  ;;  %s29_s13 = int_to_ptr.vmem [resolvable:$true] %s28_s13  ;;  %s1845_s15 = int_to_ptr.vmem [resolvable:$true] %s16_s15 }
   0x4   :  { %s1712_s18 = scalar_lea.hbm %s2104_s1, 2304 }
   0x5   :  { %p1713_p0 = scmp.ne.s32.totalorder %s2104_s1, %s1712_s18  ;;  %p1716_p1 = scmp.lt.u32.totalorder %s1712_s18, %s2104_s1 }
   0x7   :  { %p1718_p2 = pnand %p1716_p1, %p1713_p0 }
   0x9   :  { %1721 = shalt.err (!%p1718_p2)
}
   0xa   :  { %s1722_s23 = scalar_lea.vmem %s29_s13, 2304  ;;  %p1727_p4 = scmp.lt.s32.totalorder %s29_s13, %s29_s13 }
   0xb   :  { %p1723_p3 = scmp.ne.s32.totalorder %s29_s13, %s1722_s23  ;;  %p1728_p5 = scmp.lt.s32.totalorder %s1722_s23, %s1722_s23 }
   0xd   :  { %p1729_p6 = por %p1728_p5, %p1727_p4 }
   0xf   :  { %p1730_p7 = pnand %p1729_p6, %p1723_p3 }
  0x11   :  { %1733 = shalt.err (!%p1730_p7)
}
  0x12   :  { %s1816_s24 = smov 128   ;;  %s1817_s25 = smov 8  }
  0x13   :  { %34 = dma.hbm_to_vmem [thread:$0]  %s2104_s1, 2304, %s29_s13, [#allocation6], %s1816_s24, %s1816_s24, %s1817_s25  }
  0x14   :  { %s1734_s30 = scalar_lea.hbm %s2103_s0, 768 }
  0x15   :  { %p1735_p8 = scmp.ne.s32.totalorder %s2103_s0, %s1734_s30  ;;  %p1738_p9 = scmp.lt.u32.totalorder %s1734_s30, %s2103_s0 }
  0x17   :  { %p1740_p10 = pnand %p1738_p9, %p1735_p8 }
  0x19   :  { %1743 = shalt.err (!%p1740_p10)
}
  0x1a   :  { %s1744_s8 = scalar_lea.vmem %s1845_s15, 768  ;;  %p1749_p12 = scmp.lt.s32.totalorder %s1845_s15, %s1845_s15 }
  0x1b   :  { %p1745_p11 = scmp.ne.s32.totalorder %s1845_s15, %s1744_s8  ;;  %p1750_p13 = scmp.lt.s32.totalorder %s1744_s8, %s1744_s8 }
  0x1d   :  { %p1751_p0 = por %p1750_p13, %p1749_p12 }
  0x1f   :  { %p1752_p1 = pnand %p1751_p0, %p1745_p11 }
  0x21   :  { %1755 = shalt.err (!%p1752_p1)
}
  0x22   :  { %22 = dma.hbm_to_vmem [thread:$0]  %s2103_s0, 768, %s1845_s15, [#allocation3], %s1816_s24, %s1816_s24, %s1817_s25  }
  0x23   :  { %s1818_s10 = smov [#allocation7]   ;;  %s1756_s14 = scalar_lea.hbm %s2105_s2, 768 }
  0x24   :  { %s40_s11 = sshll.u32 %s1818_s10, 4  ;;  %p1757_p2 = scmp.ne.s32.totalorder %s2105_s2, %s1756_s14  ;;  %s41_s11 = int_to_ptr.vmem [resolvable:$true] %s40_s11 }
  0x25   :  { %p1760_p3 = scmp.lt.u32.totalorder %s1756_s14, %s2105_s2 }
  0x27   :  { %p1762_p4 = pnand %p1760_p3, %p1757_p2 }
  0x29   :  { %1765 = shalt.err (!%p1762_p4)
}
  0x2a   :  { %s1766_s20 = scalar_lea.vmem %s41_s11, 768  ;;  %p1771_p6 = scmp.lt.s32.totalorder %s41_s11, %s41_s11 }
  0x2b   :  { %p1767_p5 = scmp.ne.s32.totalorder %s41_s11, %s1766_s20  ;;  %p1772_p7 = scmp.lt.s32.totalorder %s1766_s20, %s1766_s20 }
  0x2d   :  { %p1773_p8 = por %p1772_p7, %p1771_p6 }
  0x2f   :  { %p1774_p9 = pnand %p1773_p8, %p1767_p5 }
  0x31   :  { %1777 = shalt.err (!%p1774_p9)
}
  0x32   :  { %46 = dma.hbm_to_vmem [thread:$0]  %s2105_s2, 768, %s41_s11, [#allocation6], %s1816_s24, %s1816_s24, %s1817_s25  }
  0x33   :  { %1804 = dma.done.wait [#allocation3], 768  }
  0x34   :  { %1805 = vsyncadd [#allocation3], 4294966528 }
  0x35   :  { %1806 = dma.done.wait [#allocation6], 3072  }
  0x36   :  { %1807 = vsyncadd [#allocation6], 4294964224  ;;  %v56_v0 = vlaneseq  ;;  %v1901_v2 = vld [vmem:[#allocation5] sm:$0xff]  ;;  %v1903_v3 = vld [vmem:[#allocation5 + $0x8] sm:$0xff]  ;;  %s1949_s2 = smov 0  }
  0x37   :  { %v1905_v4 = vld [vmem:[#allocation5 + $0x10] sm:$0xff]  ;;  %v1909_v6 = vld [vmem:[#allocation5 + $0x18] sm:$0xff]  ;;  %v1911_v7 = vld [vmem:[#allocation5 + $0x20] sm:$0xff] }
  0x38   :  { %v1897_v1 = vand.u32 127, %v56_v0  ;;  %v1907_v5 = vld [vmem:[#allocation7] sm:$0xff]  ;;  %v1913_v8 = vld [vmem:[#allocation5 + $0x28] sm:$0xff]  ;;  %v1915_v9 = vld [vmem:[#allocation7 + $0x8] sm:$0xff] }
  0x39   :  { %v1917_v10 = vld [vmem:[#allocation5 + $0x30] sm:$0xff]  ;;  %v1919_v11 = vld [vmem:[#allocation5 + $0x38] sm:$0xff]  ;;  %v1921_v12 = vld [vmem:[#allocation5 + $0x40] sm:$0xff] }
  0x3a   :  { %vm58_vm0 = vcmp.ne.s32.totalorder %v1897_v1, 0  ;;  %vm59_vm1 = vcmp.ne.s32.totalorder %v1897_v1, 99  ;;  %v1923_v13 = vld [vmem:[#allocation7 + $0x10] sm:$0xff]  ;;  %v1925_v14 = vld [vmem:[#allocation5 + $0x48] sm:$0xff]  ;;  %v1927_v15 = vld [vmem:[#allocation5 + $0x50] sm:$0xff] }
  0x3b   :  { %v1929_v16 = vld [vmem:[#allocation5 + $0x58] sm:$0xff]  ;;  %v1931_v17 = vld [vmem:[#allocation7 + $0x18] sm:$0xff]  ;;  %v1933_v18 = vld [vmem:[#allocation5 + $0x60] sm:$0xff] }
  0x3c   :  { %v1935_v19 = vld [vmem:[#allocation5 + $0x68] sm:$0xff]  ;;  %v1937_v20 = vld [vmem:[#allocation5 + $0x70] sm:$0xff]  ;;  %v1941_v22 = vld [vmem:[#allocation5 + $0x78] sm:$0xff] }
  0x3d   :  { %v1939_v21 = vld [vmem:[#allocation7 + $0x20] sm:$0xff]  ;;  %v1943_v23 = vld [vmem:[#allocation5 + $0x80] sm:$0xff]  ;;  %v1945_v24 = vld [vmem:[#allocation5 + $0x88] sm:$0xff] }
  0x3e   :  { %v1947_v25 = vld [vmem:[#allocation7 + $0x28] sm:$0xff] }
  0x3f LB: > { %v1819_v26 = vmov 0.0   ;;  %s1536_s21 = sshll.u32 %s1812_s2, 3  ;;  %vm1820_vm2 = vmmov 0   ;;  %vm121_vm3 = vcmask 64512   ;;  %v1821_v27 = vmov 0   ;;  %s1822_s23 = smov 1   ;;  %s1812_s2 = sphi %s1949_s2, %s111_s2  }
  0x40   : > { %1601 = vmatprep.subr.mxu0 %v1819_v26  ;;  %1606 = vmatprep.subr.mxu1 %v1819_v26  ;;  %s113_s22 = scalar_lea.vmem [#allocation2], %s1536_s21  ;;  %s1823_s26 = smov 127  }
  0x41   : > { %1603 = vmatprep.mubr.msk.f32.mxu0 %vm1820_vm2, %v1819_v26  ;;  %1608 = vmatprep.mubr.msk.f32.mxu1 %vm1820_vm2, %v1819_v26  ;;  %v114_v28 = vld [vmem:[%s113_s22] sm:$0xff]  ;;  %s1507_s27 = scalar_lea.vmem [#allocation8], %s1536_s21  ;;  %s111_s2 = sadd.s32 1, %s1812_s2  }
  0x42   : > { %1710 = vset.pattern.permute.xlu1 %v1821_v27  ;;  %1711 = vset.pattern.permute.xlu0 %v1821_v27  ;;  %p108_p10 = scmp.ge.s32.totalorder %s111_s2, 6  }
  0x43   : > { %344 = vperm.xlu1 %1710, %v1907_v5   ;;  %115 = vrot.lane.b32.xlu0 %v114_v28, %s1822_s23  ;;  %s1824_s28 = smov (%p108_p10), [#allocation8]  }
  0x44   : > { %1607 = vmatpush3.msra.mxu1 %v114_v28  ;;  %s1514_s29 = sshll.u32 (%p108_p10), %s1824_s28, 4  ;;  %s1515_s29 = int_to_ptr.vmem [resolvable:$true] %s1514_s29 }
  0x45   : > { %1609 = vmatmul.mubr.msk.f32.vlgmr.msra.gmra.mrb[0].mxu1 %vm121_vm3, %v1903_v3  ;;  %1616 = vmatprep.subr.mxu1 %v1819_v26  ;;  %s1778_s30 = scalar_lea.vmem (%p108_p10), %s1515_s29, 768  ;;  %p1783_p12 = scmp.lt.s32.totalorder (%p108_p10), %s1515_s29, %s1515_s29 }
  0x46   : > { %1618 = vmatprep.mubr.msk.f32.mxu1 %vm1820_vm2, %v1819_v26  ;;  %p1779_p11 = scmp.ne.s32.totalorder (%p108_p10), %s1515_s29, %s1778_s30  ;;  %p1784_p13 = scmp.lt.s32.totalorder (%p108_p10), %s1778_s30, %s1778_s30 }
  0x47   : > { %118 = vrot.lane.b32.xlu0 %v114_v28, %s1823_s26 }
  0x48   :  { %p1785_p0 = por (%p108_p10), %p1784_p13, %p1783_p12 }
  0x4a   :  { %p1786_p1 = pnand (%p108_p10), %p1785_p0, %p1779_p11 }
  0xb5   : > { %v116_v29 = vpop.permute.xlu0 %115 }
  0xb6   : > { %1602 = vmatpush3.msk.msra.mxu0 %vm58_vm0, %v116_v29 }
  0xb7   : > { %1604 = vmatmul.mubr.msk.f32.vlgmr.msra.gmra.mrb[0].mxu0 %vm121_vm3, %v1901_v2  ;;  %1611 = vmatprep.subr.mxu0 %v1819_v26 }
  0xb8   : > { %1613 = vmatprep.mubr.msk.f32.mxu0 %vm1820_vm2, %v1819_v26 }
  0xb9   : > { %v119_v30 = vpop.permute.xlu0 %118 }
  0xba   : > { %1612 = vmatpush3.msk.msra.mxu0 %vm59_vm1, %v119_v30 }
  0xbb   : > { %1614 = vmatmul.mubr.msk.f32.vlgmr.msra.gmra.mrb[2].mxu0 %vm121_vm3, %v1905_v4  ;;  %1621 = vmatprep.subr.mxu0 %v1819_v26 }
  0xbc   : > { %1623 = vmatprep.mubr.msk.f32.mxu0 %vm1820_vm2, %v1819_v26 }
  0xc2   : > { %v345_v37 = vpop.permute.xlu1 %344 }
 0x118   : > { %v264_v31 = vpop.f32.mrb[0].mxu1 }
 0x119   : > { %v1610_v32 = vpop.f32.mrb[1].mxu1 }
 0x18a   : > { %v191_v33 = vpop.f32.mrb[0].mxu0 }
 0x18b   : > { %v265_v34 = vadd.f32 %v264_v31, %v191_v33  ;;  %v1605_v35 = vpop.f32.mrb[1].mxu0 }
 0x18e   : > { %v337_v36 = vpop.f32.mrb[2].mxu0 }
 0x18f   : > { %v341_v38 = vadd.f32 %v337_v36, %v265_v34  ;;  %v1615_v39 = vpop.f32.mrb[3].mxu0 }
 0x191   : > { %v347_v40 = vadd.f32 %v345_v37, %v341_v38 }
 0x193   : > { %v348_v41 = vmax.f32 %v347_v40, 0.0 }
 0x195   : > { %352 = vrot.lane.b32.xlu0 %v348_v41, %s1823_s26  ;;  %349 = vrot.lane.b32.xlu1 %v348_v41, %s1822_s23 }
 0x196   : > { %1622 = vmatpush3.msra.mxu0 %v348_v41 }
 0x197   : > { %1624 = vmatmul.mubr.msk.f32.vlgmr.msra.gmra.mrb[4].mxu0 %vm121_vm3, %v1911_v7  ;;  %1631 = vmatprep.subr.mxu0 %v1819_v26 }
 0x198   : > { %1633 = vmatprep.mubr.msk.f32.mxu0 %vm1820_vm2, %v1819_v26 }
 0x199   : > { %577 = vperm.xlu1 %1710, %v1915_v9  }
 0x207   : > { %v350_v42 = vpop.permute.xlu1 %349  ;;  %v353_v43 = vpop.permute.xlu0 %352 }
 0x208   : > { %1617 = vmatpush3.msk.msra.mxu1 %vm58_vm0, %v350_v42 }
 0x209   : > { %1619 = vmatmul.mubr.msk.f32.vlgmr.msra.gmra.mrb[2].mxu1 %vm121_vm3, %v1909_v6  ;;  %1626 = vmatprep.subr.mxu1 %v1819_v26 }
 0x20a   : > { %1627 = vmatpush3.msk.msra.mxu1 %vm59_vm1, %v353_v43  ;;  %1628 = vmatprep.mubr.msk.f32.mxu1 %vm1820_vm2, %v1819_v26 }
 0x20b   : > { %1636 = vmatprep.subr.mxu1 %v1819_v26 }
 0x20d   : > { %1629 = vmatmul.mubr.msk.f32.vlgmr.msra.gmra.mrb[4].mxu1 %vm121_vm3, %v1913_v8 }
 0x20e   : > { %1638 = vmatprep.mubr.msk.f32.mxu1 %vm1820_vm2, %v1819_v26 }
 0x218   : > { %v578_v52 = vpop.permute.xlu1 %577 }
 0x26a   : > { %v497_v44 = vpop.f32.mrb[4].mxu0 }
 0x26b   : > { %v1625_v45 = vpop.f32.mrb[5].mxu0 }
 0x2dc   : > { %v424_v46 = vpop.f32.mrb[2].mxu1 }
 0x2dd   : > { %v498_v47 = vadd.f32 %v497_v44, %v424_v46  ;;  %v1620_v48 = vpop.f32.mrb[3].mxu1 }
 0x2e0   : > { %v570_v49 = vpop.f32.mrb[4].mxu1 }
 0x2e1   : > { %v574_v50 = vadd.f32 %v570_v49, %v498_v47  ;;  %v1630_v51 = vpop.f32.mrb[5].mxu1 }
 0x2e3   : > { %v580_v53 = vadd.f32 %v578_v52, %v574_v50 }
 0x2e5   : > { %v581_v54 = vmax.f32 %v580_v53, 0.0 }
 0x2e7   : > { %585 = vrot.lane.b32.xlu1 %v581_v54, %s1823_s26  ;;  %582 = vrot.lane.b32.xlu0 %v581_v54, %s1822_s23 }
 0x2e8   : > { %1637 = vmatpush3.msra.mxu1 %v581_v54 }
 0x2e9   : > { %1639 = vmatmul.mubr.msk.f32.vlgmr.msra.gmra.mrb[6].mxu1 %vm121_vm3, %v1919_v11  ;;  %1646 = vmatprep.subr.mxu1 %v1819_v26 }
 0x2ea   : > { %1648 = vmatprep.mubr.msk.f32.mxu1 %vm1820_vm2, %v1819_v26 }
 0x2eb   : > { %810 = vperm.xlu0 %1711, %v1923_v13  }
 0x2ef   : > { %1043 = vperm.xlu0 %1711, %v1931_v17  }
 0x359   : > { %v583_v55 = vpop.permute.xlu0 %582  ;;  %v586_v56 = vpop.permute.xlu1 %585 }
 0x35a   : > { %1632 = vmatpush3.msk.msra.mxu0 %vm58_vm0, %v583_v55 }
 0x35b   : > { %1634 = vmatmul.mubr.msk.f32.vlgmr.msra.gmra.mrb[6].mxu0 %vm121_vm3, %v1917_v10  ;;  %1641 = vmatprep.subr.mxu0 %v1819_v26 }
 0x35c   : > { %1642 = vmatpush3.msk.msra.mxu0 %vm59_vm1, %v586_v56  ;;  %1643 = vmatprep.mubr.msk.f32.mxu0 %vm1820_vm2, %v1819_v26 }
 0x35d   : > { %1651 = vmatprep.subr.mxu0 %v1819_v26 }
 0x35f   : > { %1644 = vmatmul.mubr.msk.f32.vlgmr.msra.gmra.mrb[8].mxu0 %vm121_vm3, %v1921_v12 }
 0x360   : > { %1653 = vmatprep.mubr.msk.f32.mxu0 %vm1820_vm2, %v1819_v26 }
 0x36a   : > { %v811_v27 = vpop.permute.xlu0 %810 }
 0x36e   : > { %v1044_v40 = vpop.permute.xlu0 %1043 }
 0x3bc   : > { %v730_v57 = vpop.f32.mrb[6].mxu1 }
 0x3bd   : > { %v1640_v58 = vpop.f32.mrb[7].mxu1 }
 0x42e   : > { %v657_v59 = vpop.f32.mrb[6].mxu0 }
 0x42f   : > { %v731_v60 = vadd.f32 %v730_v57, %v657_v59  ;;  %v1635_v61 = vpop.f32.mrb[7].mxu0 }
 0x432   : > { %v803_v62 = vpop.f32.mrb[8].mxu0 }
 0x433   : > { %v807_v63 = vadd.f32 %v803_v62, %v731_v60  ;;  %v1645_v0 = vpop.f32.mrb[9].mxu0 }
 0x435   : > { %v813_v28 = vadd.f32 %v811_v27, %v807_v63 }
 0x437   : > { %v814_v29 = vmax.f32 %v813_v28, 0.0 }
 0x439   : > { %815 = vrot.lane.b32.xlu1 %v814_v29, %s1822_s23  ;;  %1652 = vmatpush3.msra.mxu0 %v814_v29 }
 0x43a   : > { %1654 = vmatmul.mubr.msk.f32.vlgmr.msra.gmra.mrb[10].mxu0 %vm121_vm3, %v1927_v15  ;;  %1661 = vmatprep.subr.mxu0 %v1819_v26 }
 0x43b   : > { %1663 = vmatprep.mubr.msk.f32.mxu0 %vm1820_vm2, %v1819_v26 }
 0x43d   : > { %818 = vrot.lane.b32.xlu1 %v814_v29, %s1823_s26 }
 0x4ab   : > { %v816_v30 = vpop.permute.xlu1 %815 }
 0x4ac   : > { %1647 = vmatpush3.msk.msra.mxu1 %vm58_vm0, %v816_v30 }
 0x4ad   : > { %1649 = vmatmul.mubr.msk.f32.vlgmr.msra.gmra.mrb[8].mxu1 %vm121_vm3, %v1925_v14  ;;  %1656 = vmatprep.subr.mxu1 %v1819_v26 }
 0x4ae   : > { %1658 = vmatprep.mubr.msk.f32.mxu1 %vm1820_vm2, %v1819_v26 }
 0x4af   : > { %v819_v31 = vpop.permute.xlu1 %818 }
 0x4b0   : > { %1657 = vmatpush3.msk.msra.mxu1 %vm59_vm1, %v819_v31 }
 0x4b1   : > { %1659 = vmatmul.mubr.msk.f32.vlgmr.msra.gmra.mrb[10].mxu1 %vm121_vm3, %v1929_v16  ;;  %1666 = vmatprep.subr.mxu1 %v1819_v26 }
 0x4b2   : > { %1668 = vmatprep.mubr.msk.f32.mxu1 %vm1820_vm2, %v1819_v26 }
 0x50d   : > { %v963_v32 = vpop.f32.mrb[10].mxu0 }
 0x50e   : > { %v1655_v33 = vpop.f32.mrb[11].mxu0 }
 0x580   : > { %v890_v34 = vpop.f32.mrb[8].mxu1 }
 0x581   : > { %v964_v35 = vadd.f32 %v963_v32, %v890_v34  ;;  %v1650_v36 = vpop.f32.mrb[9].mxu1 }
 0x584   : > { %v1036_v37 = vpop.f32.mrb[10].mxu1 }
 0x585   : > { %v1040_v38 = vadd.f32 %v1036_v37, %v964_v35  ;;  %v1660_v39 = vpop.f32.mrb[11].mxu1 }
 0x587   : > { %v1046_v41 = vadd.f32 %v1044_v40, %v1040_v38 }
 0x589   : > { %v1047_v42 = vmax.f32 %v1046_v41, 0.0 }
 0x58b   : > { %1051 = vrot.lane.b32.xlu0 %v1047_v42, %s1823_s26  ;;  %1048 = vrot.lane.b32.xlu1 %v1047_v42, %s1822_s23 }
 0x58c   : > { %1667 = vmatpush3.msra.mxu1 %v1047_v42 }
 0x58d   : > { %1676 = vmatprep.subr.mxu1 %v1819_v26  ;;  %1669 = vmatmul.mubr.msk.f32.vlgmr.msra.gmra.mrb[12].mxu1 %vm121_vm3, %v1935_v19 }
 0x58e   : > { %1677 = vmatpush3.msra.mxu1 %v1047_v42  ;;  %1678 = vmatprep.mubr.msk.f32.mxu1 %vm1820_vm2, %v1819_v26 }
 0x58f   : > { %1503 = vperm.xlu0 %1711, %v1947_v25   ;;  %1276 = vperm.xlu1 %1710, %v1939_v21  }
 0x590   : > { %1686 = vmatprep.subr.mxu1 %v1819_v26 }
 0x591   : > { %1679 = vmatmul.mubr.msk.f32.vlgmr.msra.gmra.mrb[14].mxu1 %vm121_vm3, %v1943_v23 }
 0x592   : > { %1688 = vmatprep.mubr.msk.f32.mxu1 %vm1820_vm2, %v1819_v26 }
 0x5fd   : > { %v1049_v43 = vpop.permute.xlu1 %1048  ;;  %v1052_v44 = vpop.permute.xlu0 %1051 }
 0x5fe   : > { %1662 = vmatpush3.msk.msra.mxu0 %vm58_vm0, %v1049_v43 }
 0x5ff   : > { %1664 = vmatmul.mubr.msk.f32.vlgmr.msra.gmra.mrb[12].mxu0 %vm121_vm3, %v1933_v18  ;;  %1671 = vmatprep.subr.mxu0 %v1819_v26 }
 0x600   : > { %1672 = vmatpush3.msk.msra.mxu0 %vm59_vm1, %v1052_v44  ;;  %1673 = vmatprep.mubr.msk.f32.mxu0 %vm1820_vm2, %v1819_v26 }
 0x601   : > { %1681 = vmatprep.subr.mxu0 %v1819_v26 }
 0x603   : > { %1674 = vmatmul.mubr.msk.f32.vlgmr.msra.gmra.mrb[14].mxu0 %vm121_vm3, %v1937_v20 }
 0x604   : > { %1682 = vmatpush3.msra.mxu0 %v814_v29  ;;  %1683 = vmatprep.mubr.msk.f32.mxu0 %vm1820_vm2, %v1819_v26 }
 0x607   : > { %1684 = vmatmul.mubr.msk.f32.vlgmr.msra.gmra.mrb[16].mxu0 %vm121_vm3, %v1941_v22 }
 0x60e   : > { %v1277_v55 = vpop.permute.xlu1 %1276  ;;  %v1504_v63 = vpop.permute.xlu0 %1503 }
 0x660   : > { %v1196_v45 = vpop.f32.mrb[12].mxu1 }
 0x661   : > { %v1670_v46 = vpop.f32.mrb[13].mxu1 }
 0x664   : > { %v1350_v47 = vpop.f32.mrb[14].mxu1 }
 0x665   : > { %v1680_v48 = vpop.f32.mrb[15].mxu1 }
 0x6d2   : > { %v1123_v49 = vpop.f32.mrb[12].mxu0 }
 0x6d3   : > { %v1197_v50 = vadd.f32 %v1196_v45, %v1123_v49  ;;  %v1665_v51 = vpop.f32.mrb[13].mxu0 }
 0x6d6   : > { %v1269_v52 = vpop.f32.mrb[14].mxu0 }
 0x6d7   : > { %v1273_v53 = vadd.f32 %v1269_v52, %v1197_v50  ;;  %v1675_v54 = vpop.f32.mrb[15].mxu0 }
 0x6d9   : > { %v1279_v56 = vadd.f32 %v1277_v55, %v1273_v53 }
 0x6da   : > { %v1423_v57 = vpop.f32.mrb[16].mxu0 }
 0x6db   : > { %v1280_v58 = vmax.f32 %v1279_v56, 0.0  ;;  %v1424_v59 = vadd.f32 %v1423_v57, %v1350_v47  ;;  %v1685_v26 = vpop.f32.mrb[17].mxu0 }
 0x6dd   : > { %1687 = vmatpush3.msra.mxu1 %v1280_v58 }
 0x6de   : > { %1689 = vmatmul.mubr.msk.f32.vlgmr.msra.gmra.mrb[16].mxu1 %vm121_vm3, %v1945_v24 }
 0x7b0   :  { %110 = sbr.rel (!%p108_p10) target bundleno = 63 (0x3f), region = 75 }
 0x7b1   : > { %v1496_v60 = vpop.f32.mrb[16].mxu1 }
 0x7b2   : > { %v1500_v61 = vadd.f32 %v1496_v60, %v1424_v59  ;;  %v1690_v62 = vpop.f32.mrb[17].mxu1 }
 0x7b4   : > { %v1506_v0 = vadd.f32 %v1504_v63, %v1500_v61 }
 0x7b6   : > { %1508 = vst [vmem:[%s1507_s27] sm:$0xff] %v1506_v0 }
 0x7b7   :  { %1789 = shalt.err (!%p1786_p1)
}
 0x7b8   :  { %s1790_s6 = scalar_lea.hbm %s2106_s3, 768 }
 0x7b9   :  { %p1791_p2 = scmp.ne.s32.totalorder %s2106_s3, %s1790_s6  ;;  %p1794_p3 = scmp.lt.u32.totalorder %s1790_s6, %s2106_s3 }
 0x7bb   :  { %p1796_p4 = pnand %p1794_p3, %p1791_p2 }
 0x7bd   :  { %1799 = shalt.err (!%p1796_p4)
}
 0x7be   :  { %1520 = dma.vmem_to_hbm [thread:$0]  %s1515_s29, 768, %s2106_s3, [#allocation4], %s1816_s24, %s1816_s24, %s1817_s25  }
 0x7bf   :  { %1808 = dma.done.wait [#allocation4], 768  }
 0x7c0   :  { %1809 = vsyncadd [#allocation4], 4294966528 }
 0x7c1   :  { %1524 = vsyncpa [#allocation3], 1 }
 0x7c2   :  { %1525 = vsyncpa [#allocation6], 1 }
 0x7c3   :  { %1526 = vsyncpa [#allocation4], 1 }

</bundles_post_ra>
